<compile_context>
chip_gen: v7x
topology: tpu7x:2x2x1
jax: 0.10.0
libtpu: 0.0.40
codegen_flags: <defaults>
</compile_context>

<pallas_src>
import math

import jax
import jax.numpy as jnp
from jax.experimental import pallas as pl
from jax.experimental.pallas import tpu as pltpu

LATENT_SIZE = 8     # latent.shape[1] in the reference script (synthetic choice)
HIDDEN = 100        # nn.Linear hidden width in the module
HP = 128            # hidden padded to full lane width (MXU-friendly K/N)
NUM_LAYERS = 7
BATCH = 2
MAX_TILE_B = 1024   # batch rows per grid step (review: amortize per-step overhead)


def _round_up(n, m):
    return ((n + m - 1) // m) * m


def _use_bf16_activations() -> bool:
    """bf16 tanh/adds only where the EUP/VPU support bf16 (v6e, v7x)."""
    try:
        kind = jax.devices()[0].device_kind.lower()
    except Exception:
        return False
    return ("v6" in kind) or ("v7" in kind)


USE_BF16_ACT = _use_bf16_activations()
ACT_DTYPE = jnp.bfloat16 if USE_BF16_ACT else jnp.float32


def consistency_kernel(x_ref, t_ref, w_ref, b_ref, out_ref):
    """One batch tile: the full 7-layer MLP + residual, all VMEM-resident.

    x_ref : (TB, D)        f32   batch tile of latents
    t_ref : (TB, 1)        f32   per-row timestep
    w_ref : (7, 128, 128)  bf16  packed zero-padded weights (layer-1 x-rows in [0])
    b_ref : (8, 128)       f32   rows 0..6 = biases, row 7 = layer-1 t-row weight
    out   : (TB, D)        f32
    """
    x = x_ref[...]
    t = t_ref[...]
    d = x.shape[-1]

    b = b_ref[...]              # (8, 128) f32 — exactly one vreg
    w1t = b[7:8, :]             # layer-1 weight row that multiplies t

    # Layer 1: concat(x, t) @ W1 folded into  x @ W1x + t * W1t  (no concat).
    acc = jnp.dot(x.astype(jnp.bfloat16), w_ref[0, :d, :],
                  preferred_element_type=jnp.float32)
    h = jnp.tanh((acc + t * w1t + b[0:1, :]).astype(ACT_DTYPE))

    # Layers 2..6: (TB,128) @ (128,128) + bias, tanh.  Padded lanes stay zero.
    # Activations stay bf16 on v6e/v7x (EUP bf16), f32 on v5e.
    for i in range(1, 6):
        acc = jnp.dot(h.astype(jnp.bfloat16), w_ref[i],
                      preferred_element_type=jnp.float32)
        h = jnp.tanh((acc + b[i:i + 1, :]).astype(ACT_DTYPE))

    # Layer 7 (no activation): only the first D output lanes are meaningful.
    y = jnp.dot(h.astype(jnp.bfloat16), w_ref[6],
                preferred_element_type=jnp.float32) + b[6:7, :]

    # Residual: x + t * model(concat(x, t)), all f32 (VPU path).
    out_ref[...] = x + t * y[:, :d]


@jax.jit
def consistency_forward(x, t, w_packed, b_packed):
    B, D = x.shape
    # Mimic the PyTorch forward's handling of a scalar / 0-d t.
    if t.ndim < 2:
        t = jnp.broadcast_to(jnp.reshape(jnp.asarray(t, x.dtype), (1, 1)), (B, 1))
    t = t.astype(x.dtype)

    # Balanced batch tiles (review fix): avoids padding B=300 up to 512 with a
    # mostly-empty second tile while keeping per-grid-step overhead amortized.
    n_tiles = pl.cdiv(max(B, 1), MAX_TILE_B)
    tile_b = _round_up(pl.cdiv(max(B, 1), n_tiles), 8)
    b_pad = n_tiles * tile_b
    if b_pad != B:
        x_in = jnp.zeros((b_pad, D), x.dtype).at[:B].set(x)
        t_in = jnp.zeros((b_pad, 1), x.dtype).at[:B].set(t)
    else:
        x_in, t_in = x, t
    grid = (n_tiles,)

    out = pl.pallas_call(
        consistency_kernel,
        out_shape=jax.ShapeDtypeStruct((b_pad, D), jnp.float32),
        grid_spec=pltpu.PrefetchScalarGridSpec(
            num_scalar_prefetch=0,
            grid=grid,
            in_specs=[
                pl.BlockSpec((tile_b, D), lambda i: (i, 0)),
                pl.BlockSpec((tile_b, 1), lambda i: (i, 0)),
                # Constant block index: params DMA'd once, VMEM-resident across
                # every batch tile of the grid.
                pl.BlockSpec((NUM_LAYERS, HP, HP), lambda i: (0, 0, 0)),
                pl.BlockSpec((8, HP), lambda i: (0, 0)),
            ],
            out_specs=pl.BlockSpec((tile_b, D), lambda i: (i, 0)),
        ),
        compiler_params=pltpu.CompilerParams(
            dimension_semantics=("parallel",)),
    )(x_in, t_in, w_packed, b_packed)
    return out[:B]


def init_packed_params(key, latent_size=LATENT_SIZE, hidden=HIDDEN, hp=HP):
    """PyTorch-style init U(-1/sqrt(fan_in), 1/sqrt(fan_in)), packed for the kernel.

    Returns:
      w_packed : (7, hp, hp)  bf16, zero-padded; w_packed[0][:D] = layer-1 x-rows
      b_packed : (8, hp)      f32 ; rows 0..6 biases, row 7 = layer-1 t-row
      (ws, bs) : raw f32 per-layer params (weights stored (in, out)) for reference
    """
    dims = [(latent_size + 1, hidden)] + [(hidden, hidden)] * 5 + [(hidden, latent_size)]
    ws, bs = [], []
    for fan_in, fan_out in dims:
        key, kw, kb = jax.random.split(key, 3)
        bound = 1.0 / math.sqrt(fan_in)
        ws.append(jax.random.uniform(kw, (fan_in, fan_out), jnp.float32, -bound, bound))
        bs.append(jax.random.uniform(kb, (fan_out,), jnp.float32, -bound, bound))

    w_packed = jnp.zeros((NUM_LAYERS, hp, hp), jnp.float32)
    b_packed = jnp.zeros((8, hp), jnp.float32)
    # Layer 1: split into x-rows (go into the packed weight buffer) and the t-row
    # (kept f32 in the bias buffer, row 7).
    w_packed = w_packed.at[0, :latent_size, :hidden].set(ws[0][:latent_size])
    b_packed = b_packed.at[7, :hidden].set(ws[0][latent_size])
    for i in range(1, NUM_LAYERS):
        fi, fo = dims[i]
        w_packed = w_packed.at[i, :fi, :fo].set(ws[i])
    for i in range(NUM_LAYERS):
        b_packed = b_packed.at[i, :dims[i][1]].set(bs[i])
    return w_packed.astype(jnp.bfloat16), b_packed, (ws, bs)


def _fix_t(x, t):
    if t.ndim < 2:
        t = jnp.broadcast_to(jnp.reshape(jnp.asarray(t, x.dtype), (1, 1)),
                             (x.shape[0], 1))
    return t.astype(x.dtype)


def consistency_forward_ref_packed(x, t, w_packed, b_packed):
    """Pure-JAX mirror of the kernel arithmetic (bf16 weights, f32 accumulation,
    activations in ACT_DTYPE exactly like the kernel)."""
    t = _fix_t(x, t)
    d = x.shape[-1]
    acc = (jnp.dot(x.astype(jnp.bfloat16), w_packed[0, :d, :],
                   preferred_element_type=jnp.float32)
           + t * b_packed[7:8, :] + b_packed[0:1, :])
    h = jnp.tanh(acc.astype(ACT_DTYPE))
    for i in range(1, 6):
        acc = (jnp.dot(h.astype(jnp.bfloat16), w_packed[i],
                       preferred_element_type=jnp.float32)
               + b_packed[i:i + 1, :])
        h = jnp.tanh(acc.astype(ACT_DTYPE))
    y = (jnp.dot(h.astype(jnp.bfloat16), w_packed[6],
                 preferred_element_type=jnp.float32) + b_packed[6:7, :])
    return x + t * y[:, :d]


def consistency_forward_ref_f32(x, t, ws, bs):
    """Full-precision reference of the original module semantics."""
    t = _fix_t(x, t)
    h = jnp.concatenate([x, t], axis=1)
    for i, (w, b) in enumerate(zip(ws, bs)):
        h = jnp.dot(h, w, precision=jax.lax.Precision.HIGHEST) + b
        if i < len(ws) - 1:
            h = jnp.tanh(h)
    return x + t * h


if __name__ == "__main__":
    key = jax.random.PRNGKey(0)
    key, kx, kt, kp, kb, kb2 = jax.random.split(key, 6)

    w_packed, b_packed, (ws, bs) = init_packed_params(kp)

    # Mirror check tolerance: tanh on bf16 may differ by a few bf16 ulps between
    # the kernel EUP path and XLA; the all-f32 path matches much tighter.
    mirror_tol = 3e-2 if USE_BF16_ACT else 1e-3

    x = jax.random.normal(kx, (BATCH, LATENT_SIZE), jnp.float32)
    t = jax.random.uniform(kt, (BATCH, 1), jnp.float32)

    out = jax.block_until_ready(consistency_forward(x, t, w_packed, b_packed))
    assert out.shape == (BATCH, LATENT_SIZE)

    ref_mirror = consistency_forward_ref_packed(x, t, w_packed, b_packed)
    ref_f32 = consistency_forward_ref_f32(x, t, ws, bs)
    assert jnp.allclose(out, ref_mirror, atol=mirror_tol, rtol=mirror_tol), \
        "mismatch vs packed ref"
    # bf16 weight (and, on v6e/v7x, activation) quantization vs f32 module.
    assert jnp.allclose(out, ref_f32, atol=2e-1, rtol=2e-1), "mismatch vs f32 reference"

    # Scalar-t branch (t.ndim < 2), as exercised by sample()-style calls.
    t_scalar = jnp.float32(0.7)
    out2 = jax.block_until_ready(consistency_forward(x, t_scalar, w_packed, b_packed))
    ref2 = consistency_forward_ref_packed(x, t_scalar, w_packed, b_packed)
    assert jnp.allclose(out2, ref2, atol=mirror_tol, rtol=mirror_tol), "mismatch (scalar t)"

    # Single-tile, lightly padded path (B=300 -> b_pad=304 with balanced tiling).
    xb = jax.random.normal(kb, (300, LATENT_SIZE), jnp.float32)
    tb = jnp.full((300, 1), 0.5, jnp.float32)
    out3 = jax.block_until_ready(consistency_forward(xb, tb, w_packed, b_packed))
    ref3 = consistency_forward_ref_packed(xb, tb, w_packed, b_packed)
    assert out3.shape == (300, LATENT_SIZE)
    assert jnp.allclose(out3, ref3, atol=mirror_tol, rtol=mirror_tol), "mismatch (B=300)"

    # Multi-tile grid path: B=2100 -> 3 balanced tiles of 704 rows, exercising
    # batch tiling, padding and VMEM-resident weights across grid steps.
    xc = jax.random.normal(kb2, (2100, LATENT_SIZE), jnp.float32)
    tc = jnp.full((2100, 1), 0.25, jnp.float32)
    out4 = jax.block_until_ready(consistency_forward(xc, tc, w_packed, b_packed))
    ref4 = consistency_forward_ref_packed(xc, tc, w_packed, b_packed)
    assert out4.shape == (2100, LATENT_SIZE)
    assert jnp.allclose(out4, ref4, atol=mirror_tol, rtol=mirror_tol), "mismatch (B=2100)"

    print("KERNEL_OK")
</pallas_src>

<mosaic_0001>
module attributes {stable_mosaic.version = 11 : i64} {
  func.func @consistency_kernel(%arg0: i32, %arg1: memref<8x8xf32, #tpu.memory_space<vmem>>, %arg2: memref<8x1xf32, #tpu.memory_space<vmem>>, %arg3: memref<7x128x128xbf16, #tpu.memory_space<vmem>>, %arg4: memref<8x128xf32, #tpu.memory_space<vmem>>, %arg5: memref<8x8xf32, #tpu.memory_space<vmem>>) attributes {dimension_semantics = [#tpu.dimension_semantics<parallel>], iteration_bounds = array<i64: 1>, scalar_prefetch = 0 : i64, scratch_operands = 0 : i64, tpu.core_type = #tpu.core_type<tc>, window_params = [{transform_indices = @transform_0, window_bounds = array<i64: 8, 8>}, {transform_indices = @transform_1, window_bounds = array<i64: 8, 1>}, {pipeline_mode = #tpu.pipeline_mode<synchronous>, transform_indices = @transform_2, window_bounds = array<i64: 7, 128, 128>}, {pipeline_mode = #tpu.pipeline_mode<synchronous>, transform_indices = @transform_3, window_bounds = array<i64: 8, 128>}, {transform_indices = @transform_4, window_bounds = array<i64: 8, 8>}]} {
    %c0 = arith.constant 0 : index
    %c0_0 = arith.constant 0 : index
    %0 = vector.load %arg1[%c0, %c0_0] : memref<8x8xf32, #tpu.memory_space<vmem>>, vector<8x8xf32>
    %c0_1 = arith.constant 0 : index
    %c0_2 = arith.constant 0 : index
    %1 = vector.load %arg2[%c0_1, %c0_2] : memref<8x1xf32, #tpu.memory_space<vmem>>, vector<8x1xf32>
    %c0_3 = arith.constant 0 : index
    %c0_4 = arith.constant 0 : index
    %2 = vector.load %arg4[%c0_3, %c0_4] : memref<8x128xf32, #tpu.memory_space<vmem>>, vector<8x128xf32>
    %3 = vector.extract_strided_slice %2 {offsets = [7, 0], sizes = [1, 128], strides = [1, 1]} : vector<8x128xf32> to vector<1x128xf32>
    %4 = arith.truncf %0 : vector<8x8xf32> to vector<8x8xbf16>
    %c0_5 = arith.constant 0 : index
    %c0_6 = arith.constant 0 : index
    %c0_7 = arith.constant 0 : index
    %5 = vector.load %arg3[%c0_5, %c0_6, %c0_7] : memref<7x128x128xbf16, #tpu.memory_space<vmem>>, vector<1x8x128xbf16>
    %6 = vector.shape_cast %5 : vector<1x8x128xbf16> to vector<8x128xbf16>
    %cst = arith.constant dense<0.000000e+00> : vector<8x128xf32>
    %7 = tpu.matmul %4, %6, %cst {dimension_numbers = #tpu.dot_dimension_numbers<[1], [0], [0], [1], [0, 0, 1, 1], [], []>} : vector<8x8xbf16>, vector<8x128xbf16>, vector<8x128xf32> -> vector<8x128xf32>
    %8 = vector.broadcast %1 : vector<8x1xf32> to vector<8x128xf32>
    %9 = vector.broadcast %3 : vector<1x128xf32> to vector<8x128xf32>
    %10 = arith.mulf %8, %9 : vector<8x128xf32>
    %11 = arith.addf %7, %10 : vector<8x128xf32>
    %12 = vector.extract_strided_slice %2 {offsets = [0, 0], sizes = [1, 128], strides = [1, 1]} : vector<8x128xf32> to vector<1x128xf32>
    %13 = vector.broadcast %12 : vector<1x128xf32> to vector<8x128xf32>
    %14 = arith.addf %11, %13 : vector<8x128xf32>
    %15 = math.tanh %14 : vector<8x128xf32>
    %16 = arith.truncf %15 : vector<8x128xf32> to vector<8x128xbf16>
    %c1 = arith.constant 1 : index
    %c0_8 = arith.constant 0 : index
    %c0_9 = arith.constant 0 : index
    %17 = vector.load %arg3[%c1, %c0_8, %c0_9] : memref<7x128x128xbf16, #tpu.memory_space<vmem>>, vector<1x128x128xbf16>
    %18 = vector.shape_cast %17 : vector<1x128x128xbf16> to vector<128x128xbf16>
    %cst_10 = arith.constant dense<0.000000e+00> : vector<8x128xf32>
    %19 = tpu.matmul %16, %18, %cst_10 {dimension_numbers = #tpu.dot_dimension_numbers<[1], [0], [0], [1], [0, 0, 1, 1], [], []>} : vector<8x128xbf16>, vector<128x128xbf16>, vector<8x128xf32> -> vector<8x128xf32>
    %20 = vector.extract_strided_slice %2 {offsets = [1, 0], sizes = [1, 128], strides = [1, 1]} : vector<8x128xf32> to vector<1x128xf32>
    %21 = vector.broadcast %20 : vector<1x128xf32> to vector<8x128xf32>
    %22 = arith.addf %19, %21 : vector<8x128xf32>
    %23 = math.tanh %22 : vector<8x128xf32>
    %24 = arith.truncf %23 : vector<8x128xf32> to vector<8x128xbf16>
    %c2 = arith.constant 2 : index
    %c0_11 = arith.constant 0 : index
    %c0_12 = arith.constant 0 : index
    %25 = vector.load %arg3[%c2, %c0_11, %c0_12] : memref<7x128x128xbf16, #tpu.memory_space<vmem>>, vector<1x128x128xbf16>
    %26 = vector.shape_cast %25 : vector<1x128x128xbf16> to vector<128x128xbf16>
    %cst_13 = arith.constant dense<0.000000e+00> : vector<8x128xf32>
    %27 = tpu.matmul %24, %26, %cst_13 {dimension_numbers = #tpu.dot_dimension_numbers<[1], [0], [0], [1], [0, 0, 1, 1], [], []>} : vector<8x128xbf16>, vector<128x128xbf16>, vector<8x128xf32> -> vector<8x128xf32>
    %28 = vector.extract_strided_slice %2 {offsets = [2, 0], sizes = [1, 128], strides = [1, 1]} : vector<8x128xf32> to vector<1x128xf32>
    %29 = vector.broadcast %28 : vector<1x128xf32> to vector<8x128xf32>
    %30 = arith.addf %27, %29 : vector<8x128xf32>
    %31 = math.tanh %30 : vector<8x128xf32>
    %32 = arith.truncf %31 : vector<8x128xf32> to vector<8x128xbf16>
    %c3 = arith.constant 3 : index
    %c0_14 = arith.constant 0 : index
    %c0_15 = arith.constant 0 : index
    %33 = vector.load %arg3[%c3, %c0_14, %c0_15] : memref<7x128x128xbf16, #tpu.memory_space<vmem>>, vector<1x128x128xbf16>
    %34 = vector.shape_cast %33 : vector<1x128x128xbf16> to vector<128x128xbf16>
    %cst_16 = arith.constant dense<0.000000e+00> : vector<8x128xf32>
    %35 = tpu.matmul %32, %34, %cst_16 {dimension_numbers = #tpu.dot_dimension_numbers<[1], [0], [0], [1], [0, 0, 1, 1], [], []>} : vector<8x128xbf16>, vector<128x128xbf16>, vector<8x128xf32> -> vector<8x128xf32>
    %36 = vector.extract_strided_slice %2 {offsets = [3, 0], sizes = [1, 128], strides = [1, 1]} : vector<8x128xf32> to vector<1x128xf32>
    %37 = vector.broadcast %36 : vector<1x128xf32> to vector<8x128xf32>
    %38 = arith.addf %35, %37 : vector<8x128xf32>
    %39 = math.tanh %38 : vector<8x128xf32>
    %40 = arith.truncf %39 : vector<8x128xf32> to vector<8x128xbf16>
    %c4 = arith.constant 4 : index
    %c0_17 = arith.constant 0 : index
    %c0_18 = arith.constant 0 : index
    %41 = vector.load %arg3[%c4, %c0_17, %c0_18] : memref<7x128x128xbf16, #tpu.memory_space<vmem>>, vector<1x128x128xbf16>
    %42 = vector.shape_cast %41 : vector<1x128x128xbf16> to vector<128x128xbf16>
    %cst_19 = arith.constant dense<0.000000e+00> : vector<8x128xf32>
    %43 = tpu.matmul %40, %42, %cst_19 {dimension_numbers = #tpu.dot_dimension_numbers<[1], [0], [0], [1], [0, 0, 1, 1], [], []>} : vector<8x128xbf16>, vector<128x128xbf16>, vector<8x128xf32> -> vector<8x128xf32>
    %44 = vector.extract_strided_slice %2 {offsets = [4, 0], sizes = [1, 128], strides = [1, 1]} : vector<8x128xf32> to vector<1x128xf32>
    %45 = vector.broadcast %44 : vector<1x128xf32> to vector<8x128xf32>
    %46 = arith.addf %43, %45 : vector<8x128xf32>
    %47 = math.tanh %46 : vector<8x128xf32>
    %48 = arith.truncf %47 : vector<8x128xf32> to vector<8x128xbf16>
    %c5 = arith.constant 5 : index
    %c0_20 = arith.constant 0 : index
    %c0_21 = arith.constant 0 : index
    %49 = vector.load %arg3[%c5, %c0_20, %c0_21] : memref<7x128x128xbf16, #tpu.memory_space<vmem>>, vector<1x128x128xbf16>
    %50 = vector.shape_cast %49 : vector<1x128x128xbf16> to vector<128x128xbf16>
    %cst_22 = arith.constant dense<0.000000e+00> : vector<8x128xf32>
    %51 = tpu.matmul %48, %50, %cst_22 {dimension_numbers = #tpu.dot_dimension_numbers<[1], [0], [0], [1], [0, 0, 1, 1], [], []>} : vector<8x128xbf16>, vector<128x128xbf16>, vector<8x128xf32> -> vector<8x128xf32>
    %52 = vector.extract_strided_slice %2 {offsets = [5, 0], sizes = [1, 128], strides = [1, 1]} : vector<8x128xf32> to vector<1x128xf32>
    %53 = vector.broadcast %52 : vector<1x128xf32> to vector<8x128xf32>
    %54 = arith.addf %51, %53 : vector<8x128xf32>
    %55 = math.tanh %54 : vector<8x128xf32>
    %56 = arith.truncf %55 : vector<8x128xf32> to vector<8x128xbf16>
    %c6 = arith.constant 6 : index
    %c0_23 = arith.constant 0 : index
    %c0_24 = arith.constant 0 : index
    %57 = vector.load %arg3[%c6, %c0_23, %c0_24] : memref<7x128x128xbf16, #tpu.memory_space<vmem>>, vector<1x128x128xbf16>
    %58 = vector.shape_cast %57 : vector<1x128x128xbf16> to vector<128x128xbf16>
    %cst_25 = arith.constant dense<0.000000e+00> : vector<8x128xf32>
    %59 = tpu.matmul %56, %58, %cst_25 {dimension_numbers = #tpu.dot_dimension_numbers<[1], [0], [0], [1], [0, 0, 1, 1], [], []>} : vector<8x128xbf16>, vector<128x128xbf16>, vector<8x128xf32> -> vector<8x128xf32>
    %60 = vector.extract_strided_slice %2 {offsets = [6, 0], sizes = [1, 128], strides = [1, 1]} : vector<8x128xf32> to vector<1x128xf32>
    %61 = vector.broadcast %60 : vector<1x128xf32> to vector<8x128xf32>
    %62 = arith.addf %59, %61 : vector<8x128xf32>
    %63 = vector.extract_strided_slice %62 {offsets = [0, 0], sizes = [8, 8], strides = [1, 1]} : vector<8x128xf32> to vector<8x8xf32>
    %64 = vector.broadcast %1 : vector<8x1xf32> to vector<8x8xf32>
    %65 = arith.mulf %64, %63 : vector<8x8xf32>
    %66 = arith.addf %0, %65 : vector<8x8xf32>
    %c0_26 = arith.constant 0 : index
    %c0_27 = arith.constant 0 : index
    %67 = vector.load %arg5[%c0_26, %c0_27] : memref<8x8xf32, #tpu.memory_space<vmem>>, vector<8x8xf32>
    tpu.vector_store %arg5[%c0_26, %c0_27], %66 {strides = array<i32>} : memref<8x8xf32, #tpu.memory_space<vmem>>, vector<8x8xf32>,
    return
  }
  func.func @transform_0(%arg0: i32) -> (i32, i32) {
    %c0_i32 = arith.constant 0 : i32
    %c0_i32_0 = arith.constant 0 : i32
    return %arg0, %c0_i32 : i32, i32
  }
  func.func @transform_1(%arg0: i32) -> (i32, i32) {
    %c0_i32 = arith.constant 0 : i32
    %c0_i32_0 = arith.constant 0 : i32
    return %arg0, %c0_i32 : i32, i32
  }
  func.func @transform_2(%arg0: i32) -> (i32, i32, i32) {
    %c0_i32 = arith.constant 0 : i32
    %c0_i32_0 = arith.constant 0 : i32
    %c0_i32_1 = arith.constant 0 : i32
    %c0_i32_2 = arith.constant 0 : i32
    return %c0_i32, %c0_i32_0, %c0_i32_1 : i32, i32, i32
  }
  func.func @transform_3(%arg0: i32) -> (i32, i32) {
    %c0_i32 = arith.constant 0 : i32
    %c0_i32_0 = arith.constant 0 : i32
    %c0_i32_1 = arith.constant 0 : i32
    return %c0_i32, %c0_i32_0 : i32, i32
  }
  func.func @transform_4(%arg0: i32) -> (i32, i32) {
    %c0_i32 = arith.constant 0 : i32
    %c0_i32_0 = arith.constant 0 : i32
    return %arg0, %c0_i32 : i32, i32
  }
}

</mosaic_0001>

<bundles_post_ra>
// kernel: consistency_forward.1
= control target key start
LH: loop header
LB: loop body
LE: loop exit
PB: predicated region body
PF: predicated region fallthrough
CT: control target
= control target key end

     0   :  { %9 = vsyncpa [#allocation3], 0  ;;  %s1096_s15 = smov [#allocation2]   ;;  %s1245_s0 = inlined_call_operand.vmem [shape: f32[8,8], index: 0, kind: input, shape index: {}]   ;;  %s1246_s1 = inlined_call_operand.vmem [shape: f32[8,1], index: 1, kind: input, shape index: {}]   ;;  %s1247_s2 = inlined_call_operand.hbm [shape: bf16[7,128,128], index: 2, kind: input, shape index: {}]   ;;  %s1248_s3 = inlined_call_operand.vmem [shape: f32[8,128], index: 3, kind: input, shape index: {}]   ;;  %s1249_s4 = inlined_call_operand.vmem [shape: f32[8,8], index: 4, kind: output, shape index: {}]  }
   0x1   :  { %s19_s16 = sshll.u32 %s1096_s15, 4  ;;  %s1072_s19 = scalar_lea.hbm %s1247_s2, 7168  ;;  %s20_s16 = int_to_ptr.vmem [resolvable:$true] %s19_s16 }
   0x2   :  { %p1073_p0 = scmp.ne.s32.totalorder %s1247_s2, %s1072_s19  ;;  %p1076_p1 = scmp.lt.u32.totalorder %s1072_s19, %s1247_s2 }
   0x4   :  { %p1078_p2 = pnand %p1076_p1, %p1073_p0 }
   0x6   :  { %1081 = shalt.err (!%p1078_p2)
}
   0x7   :  { %s1082_s24 = scalar_lea.vmem %s20_s16, 7168  ;;  %p1087_p4 = scmp.lt.s32.totalorder %s20_s16, %s20_s16 }
   0x8   :  { %p1083_p3 = scmp.ne.s32.totalorder %s20_s16, %s1082_s24  ;;  %p1088_p5 = scmp.lt.s32.totalorder %s1082_s24, %s1082_s24 }
   0xa   :  { %p1089_p6 = por %p1088_p5, %p1087_p4 }
   0xc   :  { %p1090_p7 = pnand %p1089_p6, %p1083_p3 }
   0xe   :  { %1093 = shalt.err (!%p1090_p7)
}
   0xf   :  { %s1097_s25 = smov 64   ;;  %s1098_s26 = smov 4  }
  0x10   :  { %25 = dma.hbm_to_vmem [thread:$0]  %s1247_s2, 7168, %s20_s16, [#allocation3], %s1097_s25, %s1097_s25, %s1098_s26  }
  0x11   :  { %1094 = dma.done.wait [#allocation3], 7168  }
  0x12   :  { %1095 = vsyncadd [#allocation3], 4294960128  ;;  %v1099_v0 = vmov 0.0   ;;  %vm1100_vm0 = vmmov 0   ;;  %v1101_v1 = vmov 0   ;;  %vm51_vm1 = vcmask 1043456  }
  0x13   :  { %879 = vmatprep.subr.bf16.mxu0 %v1099_v0  ;;  %881 = vmatprep.mubr.msk.bf16.mxu0 %vm1100_vm0, %v1099_v0  ;;  %v36_v2 = vld [vmem:[#allocation2] sm:$0xf]  ;;  %vm47_vm2 = vcmask 64512   ;;  %v1013_v8 = vld [vmem:[#allocation2 + $0x48] sm:$0xff]   ;;  %v1014_v9 = vld [vmem:[#allocation2 + $0x50] sm:$0xff]   ;;  %v42_v19 = vlaneseq }
  0x14   :  { %1011 = vset.pattern.permute.xlu0 %v1101_v1  ;;  %885 = vmatprep.subr.bf16.mxu1 %v1099_v0  ;;  %v1148_v3 = vld [vmem:[%s1245_s0] sm:$0xff]  ;;  %v53_v5 = vsel %vm51_vm1, %v36_v2, 0  ;;  %v1015_v10 = vld [vmem:[#allocation2 + $0x58] sm:$0xff]   ;;  %v1017_v12 = vld [vmem:[#allocation2 + $0x68] sm:$0xff]  }
  0x15   :  { %901 = vmatprep.mubr.msk.bf16.mxu1 %vm1100_vm0, %v1099_v0  ;;  %v33_v4 = vld [vmem:[%s1246_s1] sm:$0xff]  ;;  %v35_v6 = vpack.c.bf16 %v1148_v3, %v1148_v3  ;;  %880 = vmatpush3.bf16.msra.mxu0 %v53_v5  ;;  %v1018_v13 = vld [vmem:[#allocation2 + $0x70] sm:$0xff]   ;;  %v1019_v14 = vld [vmem:[#allocation2 + $0x78] sm:$0xff]   ;;  %v1171_v20 = vshrl.u32 %v42_v19, 7 }
  0x16   :  { %39 = vperm.xlu0 %1011, %v33_v4   ;;  %v1012_v7 = vld [vmem:[#allocation2 + $0x40] sm:$0xff]   ;;  %905 = vmatprep.subr.bf16.mxu0 %v1099_v0  ;;  %v1021_v16 = vld [vmem:[#allocation2 + $0x88] sm:$0xff]   ;;  %v1022_v17 = vld [vmem:[#allocation2 + $0x90] sm:$0xff]  }
  0x17   :  { %886 = vmatpush3.bf16.msra.mxu1 %v1012_v7  ;;  %v1016_v11 = vld [vmem:[#allocation2 + $0x60] sm:$0xff]   ;;  %v1023_v18 = vld [vmem:[#allocation2 + $0x98] sm:$0xff]   ;;  %v44_v21 = vsub.s32 7, %v1171_v20  ;;  %v97_v25 = vsub.s32 0, %v1171_v20  ;;  %v1025_v37 = vld [vmem:[#allocation2 + $0xa8] sm:$0xff]   ;;  %v121_v44 = vsub.s32 1, %v1171_v20 }
  0x18   :  { %887 = vmatprep.subr.bf16.mxu1 %v1099_v0  ;;  %882 = vmatmul.mubr.msk.bf16.vlgmr.msra.gmra.mrb[0].mxu0 %vm47_vm2, %v35_v6  ;;  %v1020_v15 = vld [vmem:[#allocation2 + $0x80] sm:$0xff]   ;;  %v1026_v38 = vld [vmem:[#allocation2 + $0xb0] sm:$0xff]   ;;  %v1027_v39 = vld [vmem:[#allocation2 + $0xb8] sm:$0xff]   ;;  %v232_v61 = vsub.s32 2, %v1171_v20 }
  0x19   :  { %921 = vmatprep.mubr.msk.bf16.mxu0 %vm1100_vm0, %v1099_v0  ;;  %906 = vmatpush3.bf16.msra.mxu0 %v1020_v15  ;;  %v1177_v22 = vld [vmem:[%s1248_s3] sm:$0xff]  ;;  %v1029_v41 = vld [vmem:[#allocation2 + $0xc8] sm:$0xff]   ;;  %v1030_v42 = vld [vmem:[#allocation2 + $0xd0] sm:$0xff]  }
  0x1a   :  { %907 = vmatprep.subr.bf16.mxu0 %v1099_v0  ;;  %v45_v23 = vrot.slane %v1177_v22, %v44_v21  ;;  %v98_v27 = vrot.slane %v1177_v22, %v97_v25  ;;  %v1024_v36 = vld [vmem:[#allocation2 + $0xa0] sm:$0xff]   ;;  %v1031_v43 = vld [vmem:[#allocation2 + $0xd8] sm:$0xff]   ;;  %v122_v45 = vrot.slane %v1177_v22, %v121_v44  ;;  %v1033_v54 = vld [vmem:[#allocation2 + $0xe8] sm:$0xff]   ;;  %v233_v62 = vrot.slane %v1177_v22, %v232_v61 }
  0x1b   :  { %888 = vmatpush3.bf16.msra.mxu1 %v1013_v8  ;;  %v1028_v40 = vld [vmem:[#allocation2 + $0xc0] sm:$0xff]   ;;  %v1034_v55 = vld [vmem:[#allocation2 + $0xf0] sm:$0xff]   ;;  %v1035_v56 = vld [vmem:[#allocation2 + $0xf8] sm:$0xff]  }
  0x1c   :  { %889 = vmatprep.subr.bf16.mxu1 %v1099_v0  ;;  %v1032_v53 = vld [vmem:[#allocation2 + $0xe0] sm:$0xff]   ;;  %v1037_v58 = vld [vmem:[#allocation2 + $0x108] sm:$0xff]   ;;  %v1038_v59 = vld [vmem:[#allocation2 + $0x110] sm:$0xff]  }
  0x1d   :  { %908 = vmatpush3.bf16.msra.mxu0 %v1021_v16  ;;  %v1036_v57 = vld [vmem:[#allocation2 + $0x100] sm:$0xff]   ;;  %v1039_v60 = vld [vmem:[#allocation2 + $0x118] sm:$0xff]   ;;  %v343_v16 = vsub.s32 3, %v1171_v20 }
  0x1e   :  { %909 = vmatprep.subr.bf16.mxu0 %v1099_v0  ;;  %v1040_v8 = vld [vmem:[#allocation2 + $0x120] sm:$0xff]   ;;  %v1047_v15 = vld [vmem:[#allocation2 + $0x158] sm:$0xff]  }
  0x1f   :  { %890 = vmatpush3.bf16.msra.mxu1 %v1014_v9  ;;  %v1041_v9 = vld [vmem:[#allocation2 + $0x128] sm:$0xff]  }
  0x20   :  { %891 = vmatprep.subr.bf16.mxu1 %v1099_v0 }
  0x21   :  { %910 = vmatpush3.bf16.msra.mxu0 %v1022_v17  ;;  %v344_v17 = vrot.slane %v1177_v22, %v343_v16 }
  0x22   :  { %911 = vmatprep.subr.bf16.mxu0 %v1099_v0 }
  0x23   :  { %892 = vmatpush3.bf16.msra.mxu1 %v1015_v10  ;;  %v1042_v10 = vld [vmem:[#allocation2 + $0x130] sm:$0xff]  }
  0x24   :  { %893 = vmatprep.subr.bf16.mxu1 %v1099_v0 }
  0x25   :  { %912 = vmatpush3.bf16.msra.mxu0 %v1023_v18 }
  0x26   :  { %913 = vmatprep.subr.bf16.mxu0 %v1099_v0 }
  0x27   :  { %894 = vmatpush3.bf16.msra.mxu1 %v1016_v11  ;;  %v1043_v11 = vld [vmem:[#allocation2 + $0x138] sm:$0xff]  }
  0x28   :  { %895 = vmatprep.subr.bf16.mxu1 %v1099_v0 }
  0x29   :  { %914 = vmatpush3.bf16.msra.mxu0 %v1024_v36  ;;  %v454_v36 = vsub.s32 4, %v1171_v20 }
  0x2a   :  { %915 = vmatprep.subr.bf16.mxu0 %v1099_v0 }
  0x2b   :  { %896 = vmatpush3.bf16.msra.mxu1 %v1017_v12  ;;  %v1044_v12 = vld [vmem:[#allocation2 + $0x140] sm:$0xff]  }
  0x2c   :  { %897 = vmatprep.subr.bf16.mxu1 %v1099_v0 }
  0x2d   :  { %916 = vmatpush3.bf16.msra.mxu0 %v1025_v37  ;;  %v455_v37 = vrot.slane %v1177_v22, %v454_v36 }
  0x2e   :  { %917 = vmatprep.subr.bf16.mxu0 %v1099_v0 }
  0x2f   :  { %898 = vmatpush3.bf16.msra.mxu1 %v1018_v13  ;;  %v1045_v13 = vld [vmem:[#allocation2 + $0x148] sm:$0xff]  }
  0x30   :  { %899 = vmatprep.subr.bf16.mxu1 %v1099_v0 }
  0x31   :  { %918 = vmatpush3.bf16.msra.mxu0 %v1026_v38 }
  0x32   :  { %919 = vmatprep.subr.bf16.mxu0 %v1099_v0 }
  0x33   :  { %900 = vmatpush3.bf16.msra.mxu1 %v1019_v14  ;;  %v1046_v14 = vld [vmem:[#allocation2 + $0x150] sm:$0xff]  }
  0x34   :  { %925 = vmatprep.subr.bf16.mxu1 %v1099_v0 }
  0x35   :  { %920 = vmatpush3.bf16.msra.mxu0 %v1027_v39 }
  0x36   :  { %945 = vmatprep.subr.bf16.mxu0 %v1099_v0 }
  0x95   :  { %v1180_v24 = vpop.permute.xlu0 %39 }
  0x96   :  { %v46_v26 = vmul.f32 %v45_v23, %v1180_v24 }
  0xeb   :  { %v89_v28 = vpop.f32.mrb[0].mxu0 }
  0xec   :  { %v90_v29 = vadd.f32 %v89_v28, %v46_v26  ;;  %v883_v30 = vpop.f32.mrb[1].mxu0  ;;  %v1048_v28 = vld [vmem:[#allocation2 + $0x160] sm:$0xff]  }
  0xed   :  { %v92_v31 = vpop.f32.mrb[2].mxu0  ;;  %v1050_v30 = vld [vmem:[#allocation2 + $0x170] sm:$0xff]  }
  0xee   :  { %v99_v32 = vadd.f32 %v98_v27, %v90_v29  ;;  %v884_v33 = vpop.f32.mrb[3].mxu0  ;;  %v1049_v29 = vld [vmem:[#allocation2 + $0x168] sm:$0xff]   ;;  %v1051_v31 = vld [vmem:[#allocation2 + $0x178] sm:$0xff]  }
  0xef   :  { %v1053_v33 = vld [vmem:[#allocation2 + $0x188] sm:$0xff]  }
  0xf0   :  { %1060 = vtanh.f32 %v99_v32  ;;  %v1052_v32 = vld [vmem:[#allocation2 + $0x180] sm:$0xff]  }
  0xfa   :  { %v1061_v34 = vpop.eup %1060 }
  0xfb   :  { %v101_v35 = vpack.c.bf16 %v1061_v34, %v1061_v34  ;;  %v1054_v34 = vld [vmem:[#allocation2 + $0x190] sm:$0xff]  }
  0xfd   :  { %902 = vmatmul.mubr.bf16.vlgmr.msra.gmra.mrb[0].mxu1 %v101_v35  ;;  %v1055_v35 = vld [vmem:[#allocation2 + $0x198] sm:$0xff]  }
  0xfe   :  { %941 = vmatprep.mubr.msk.bf16.mxu1 %vm1100_vm0, %v1099_v0  ;;  %926 = vmatpush3.bf16.msra.mxu1 %v1028_v40 }
  0xff   :  { %927 = vmatprep.subr.bf16.mxu1 %v1099_v0 }
 0x102   :  { %928 = vmatpush3.bf16.msra.mxu1 %v1029_v41 }
 0x103   :  { %929 = vmatprep.subr.bf16.mxu1 %v1099_v0 }
 0x106   :  { %930 = vmatpush3.bf16.msra.mxu1 %v1030_v42 }
 0x107   :  { %931 = vmatprep.subr.bf16.mxu1 %v1099_v0 }
 0x10a   :  { %932 = vmatpush3.bf16.msra.mxu1 %v1031_v43 }
 0x10b   :  { %933 = vmatprep.subr.bf16.mxu1 %v1099_v0 }
 0x10e   :  { %934 = vmatpush3.bf16.msra.mxu1 %v1032_v53 }
 0x10f   :  { %935 = vmatprep.subr.bf16.mxu1 %v1099_v0 }
 0x112   :  { %936 = vmatpush3.bf16.msra.mxu1 %v1033_v54 }
 0x113   :  { %937 = vmatprep.subr.bf16.mxu1 %v1099_v0 }
 0x116   :  { %938 = vmatpush3.bf16.msra.mxu1 %v1034_v55 }
 0x117   :  { %939 = vmatprep.subr.bf16.mxu1 %v1099_v0 }
 0x11a   :  { %940 = vmatpush3.bf16.msra.mxu1 %v1035_v56 }
 0x11b   :  { %965 = vmatprep.subr.bf16.mxu1 %v1099_v0 }
 0x1d0   :  { %v205_v46 = vpop.f32.mrb[0].mxu1 }
 0x1d1   :  { %v206_v47 = vadd.f32 %v205_v46, %v122_v45  ;;  %v903_v48 = vpop.f32.mrb[1].mxu1  ;;  %v1056_v45 = vld [vmem:[#allocation2 + $0x1a0] sm:$0xff]   ;;  %v1057_v46 = vld [vmem:[#allocation2 + $0x1a8] sm:$0xff]  }
 0x1d2   :  { %v208_v49 = vpop.f32.mrb[2].mxu1  ;;  %v1059_v48 = vld [vmem:[#allocation2 + $0x1b8] sm:$0xff]  }
 0x1d3   :  { %1062 = vtanh.f32 %v206_v47  ;;  %v904_v50 = vpop.f32.mrb[3].mxu1  ;;  %v1058_v47 = vld [vmem:[#allocation2 + $0x1b0] sm:$0xff]   ;;  %v565_v49 = vsub.s32 5, %v1171_v20 }
 0x1d5   :  { %v566_v50 = vrot.slane %v1177_v22, %v565_v49 }
 0x1dd   :  { %v1063_v51 = vpop.eup %1062 }
 0x1de   :  { %v212_v52 = vpack.c.bf16 %v1063_v51, %v1063_v51 }
 0x1e0   :  { %922 = vmatmul.mubr.bf16.vlgmr.msra.gmra.mrb[4].mxu0 %v212_v52 }
 0x1e1   :  { %961 = vmatprep.mubr.msk.bf16.mxu0 %vm1100_vm0, %v1099_v0  ;;  %946 = vmatpush3.bf16.msra.mxu0 %v1036_v57 }
 0x1e2   :  { %947 = vmatprep.subr.bf16.mxu0 %v1099_v0 }
 0x1e5   :  { %948 = vmatpush3.bf16.msra.mxu0 %v1037_v58  ;;  %v676_v58 = vsub.s32 6, %v1171_v20 }
 0x1e6   :  { %949 = vmatprep.subr.bf16.mxu0 %v1099_v0 }
 0x1e9   :  { %950 = vmatpush3.bf16.msra.mxu0 %v1038_v59  ;;  %v677_v59 = vrot.slane %v1177_v22, %v676_v58 }
 0x1ea   :  { %951 = vmatprep.subr.bf16.mxu0 %v1099_v0 }
 0x1ed   :  { %952 = vmatpush3.bf16.msra.mxu0 %v1039_v60 }
 0x1ee   :  { %953 = vmatprep.subr.bf16.mxu0 %v1099_v0 }
 0x1f1   :  { %954 = vmatpush3.bf16.msra.mxu0 %v1040_v8 }
 0x1f2   :  { %955 = vmatprep.subr.bf16.mxu0 %v1099_v0 }
 0x1f5   :  { %956 = vmatpush3.bf16.msra.mxu0 %v1041_v9 }
 0x1f6   :  { %957 = vmatprep.subr.bf16.mxu0 %v1099_v0 }
 0x1f9   :  { %958 = vmatpush3.bf16.msra.mxu0 %v1042_v10 }
 0x1fa   :  { %959 = vmatprep.subr.bf16.mxu0 %v1099_v0 }
 0x1fd   :  { %960 = vmatpush3.bf16.msra.mxu0 %v1043_v11 }
 0x1fe   :  { %985 = vmatprep.subr.bf16.mxu0 %v1099_v0 }
 0x2b3   :  { %v316_v63 = vpop.f32.mrb[4].mxu0 }
 0x2b4   :  { %v317_v1 = vadd.f32 %v316_v63, %v233_v62  ;;  %v923_v2 = vpop.f32.mrb[5].mxu0 }
 0x2b5   :  { %v319_v4 = vpop.f32.mrb[6].mxu0 }
 0x2b6   :  { %1064 = vtanh.f32 %v317_v1  ;;  %v924_v5 = vpop.f32.mrb[7].mxu0 }
 0x2c0   :  { %v1065_v6 = vpop.eup %1064 }
 0x2c1   :  { %v323_v7 = vpack.c.bf16 %v1065_v6, %v1065_v6 }
 0x2c3   :  { %942 = vmatmul.mubr.bf16.vlgmr.msra.gmra.mrb[4].mxu1 %v323_v7 }
 0x2c4   :  { %981 = vmatprep.mubr.msk.bf16.mxu1 %vm1100_vm0, %v1099_v0  ;;  %966 = vmatpush3.bf16.msra.mxu1 %v1044_v12 }
 0x2c5   :  { %967 = vmatprep.subr.bf16.mxu1 %v1099_v0 }
 0x2c8   :  { %968 = vmatpush3.bf16.msra.mxu1 %v1045_v13 }
 0x2c9   :  { %969 = vmatprep.subr.bf16.mxu1 %v1099_v0 }
 0x2cc   :  { %970 = vmatpush3.bf16.msra.mxu1 %v1046_v14 }
 0x2cd   :  { %971 = vmatprep.subr.bf16.mxu1 %v1099_v0 }
 0x2d0   :  { %972 = vmatpush3.bf16.msra.mxu1 %v1047_v15 }
 0x2d1   :  { %973 = vmatprep.subr.bf16.mxu1 %v1099_v0 }
 0x2d4   :  { %974 = vmatpush3.bf16.msra.mxu1 %v1048_v28 }
 0x2d5   :  { %975 = vmatprep.subr.bf16.mxu1 %v1099_v0 }
 0x2d8   :  { %976 = vmatpush3.bf16.msra.mxu1 %v1049_v29 }
 0x2d9   :  { %977 = vmatprep.subr.bf16.mxu1 %v1099_v0 }
 0x2dc   :  { %978 = vmatpush3.bf16.msra.mxu1 %v1050_v30 }
 0x2dd   :  { %979 = vmatprep.subr.bf16.mxu1 %v1099_v0 }
 0x2e0   :  { %980 = vmatpush3.bf16.msra.mxu1 %v1051_v31 }
 0x396   :  { %v427_v18 = vpop.f32.mrb[4].mxu1 }
 0x397   :  { %v428_v19 = vadd.f32 %v427_v18, %v344_v17  ;;  %v943_v21 = vpop.f32.mrb[5].mxu1 }
 0x398   :  { %v430_v23 = vpop.f32.mrb[6].mxu1 }
 0x399   :  { %1066 = vtanh.f32 %v428_v19  ;;  %v944_v25 = vpop.f32.mrb[7].mxu1 }
 0x3a3   :  { %v1067_v26 = vpop.eup %1066 }
 0x3a4   :  { %v434_v27 = vpack.c.bf16 %v1067_v26, %v1067_v26 }
 0x3a6   :  { %962 = vmatmul.mubr.bf16.vlgmr.msra.gmra.mrb[8].mxu0 %v434_v27 }
 0x3a7   :  { %1001 = vmatprep.mubr.msk.bf16.mxu0 %vm1100_vm0, %v1099_v0  ;;  %986 = vmatpush3.bf16.msra.mxu0 %v1052_v32 }
 0x3a8   :  { %987 = vmatprep.subr.bf16.mxu0 %v1099_v0 }
 0x3ab   :  { %988 = vmatpush3.bf16.msra.mxu0 %v1053_v33 }
 0x3ac   :  { %989 = vmatprep.subr.bf16.mxu0 %v1099_v0 }
 0x3af   :  { %990 = vmatpush3.bf16.msra.mxu0 %v1054_v34 }
 0x3b0   :  { %991 = vmatprep.subr.bf16.mxu0 %v1099_v0 }
 0x3b3   :  { %992 = vmatpush3.bf16.msra.mxu0 %v1055_v35 }
 0x3b4   :  { %993 = vmatprep.subr.bf16.mxu0 %v1099_v0 }
 0x3b7   :  { %994 = vmatpush3.bf16.msra.mxu0 %v1056_v45 }
 0x3b8   :  { %995 = vmatprep.subr.bf16.mxu0 %v1099_v0 }
 0x3bb   :  { %996 = vmatpush3.bf16.msra.mxu0 %v1057_v46 }
 0x3bc   :  { %997 = vmatprep.subr.bf16.mxu0 %v1099_v0 }
 0x3bf   :  { %998 = vmatpush3.bf16.msra.mxu0 %v1058_v47 }
 0x3c0   :  { %999 = vmatprep.subr.bf16.mxu0 %v1099_v0 }
 0x3c3   :  { %1000 = vmatpush3.bf16.msra.mxu0 %v1059_v48 }
 0x479   :  { %v538_v38 = vpop.f32.mrb[8].mxu0 }
 0x47a   :  { %v539_v39 = vadd.f32 %v538_v38, %v455_v37  ;;  %v963_v40 = vpop.f32.mrb[9].mxu0 }
 0x47b   :  { %v541_v41 = vpop.f32.mrb[10].mxu0 }
 0x47c   :  { %1068 = vtanh.f32 %v539_v39  ;;  %v964_v42 = vpop.f32.mrb[11].mxu0 }
 0x486   :  { %v1069_v43 = vpop.eup %1068 }
 0x487   :  { %v545_v44 = vpack.c.bf16 %v1069_v43, %v1069_v43 }
 0x489   :  { %982 = vmatmul.mubr.bf16.vlgmr.msra.gmra.mrb[8].mxu1 %v545_v44 }
 0x55c   :  { %v649_v51 = vpop.f32.mrb[8].mxu1 }
 0x55d   :  { %v650_v52 = vadd.f32 %v649_v51, %v566_v50  ;;  %v983_v53 = vpop.f32.mrb[9].mxu1 }
 0x55e   :  { %v652_v54 = vpop.f32.mrb[10].mxu1 }
 0x55f   :  { %1070 = vtanh.f32 %v650_v52  ;;  %v984_v55 = vpop.f32.mrb[11].mxu1 }
 0x569   :  { %v1071_v56 = vpop.eup %1070 }
 0x56a   :  { %v656_v57 = vpack.c.bf16 %v1071_v56, %v1071_v56 }
 0x56c   :  { %1002 = vmatmul.mubr.bf16.vlgmr.msra.gmra.mrb[12].mxu0 %v656_v57 }
 0x63f   :  { %v760_v0 = vpop.f32.mrb[12].mxu0 }
 0x640   :  { %v761_v60 = vadd.f32 %v760_v0, %v677_v59  ;;  %v1003_v61 = vpop.f32.mrb[13].mxu0 }
 0x641   :  { %v763_v62 = vpop.f32.mrb[14].mxu0 }
 0x642   :  { %v766_v63 = vmul.f32 %v761_v60, %v1180_v24  ;;  %v1004_v1 = vpop.f32.mrb[15].mxu0 }
 0x644   :  { %v767_v2 = vadd.f32 %v766_v63, %v1148_v3 }
 0x646   :  { %768 = vst.msk [vmem:[%s1249_s4] sm:$0xff] %vm47_vm2, %v767_v2 }
 0x647   :  { %773 = vsyncpa [#allocation3], 1 }

</bundles_post_ra>
